<compile_context>
chip_gen: v7x
topology: tpu7x:2x2x1
jax: 0.10.0
libtpu: 0.0.40
codegen_flags: <defaults>
</compile_context>

<pallas_src>
import jax
import jax.numpy as jnp
from jax import lax
from jax.experimental import pallas as pl
from jax.experimental.pallas import tpu as pltpu


def _round_up(x, m):
    return ((x + m - 1) // m) * m


def _vmem_capacity_bytes():
    """Per-TensorCore VMEM capacity; conservative fallback if unknown."""
    try:
        info = pltpu.get_tpu_info()
        cap = int(getattr(info, "vmem_capacity_bytes", 0))
        if cap > 0:
            return cap
    except Exception:
        pass
    return 64 * 1024 * 1024  # v7x-sized fallback


# ----------------------------- Pallas kernel ------------------------------ #

def _span_mlp_kernel(starts_ref, ends_ref,          # scalar prefetch (SMEM, int32)
                     hid_ref,                        # [B*S, H] f32, HBM (pl.ANY)
                     wemb_ref,                       # (tm, W)  f32 width-emb tile
                     w1s_ref, w1e_ref, w1w_ref,      # bf16 W1 row blocks (resident)
                     b1_ref, w2_ref, b2_ref,         # f32 / bf16 / f32
                     o_ref,                          # (tm, Lp) f32 logits tile
                     sbuf, ebuf, sem):               # scratch
    tm = sbuf.shape[0]
    base = pl.program_id(0) * tm

    # ---- fused span gather: DMA this tile's start/end rows from HBM --------
    # All copies are identical-size rows sharing one semaphore per stream, so
    # issuing them all and then waiting once per copy is well defined.
    def _issue(r, carry):
        g = base + r
        pltpu.make_async_copy(hid_ref.at[starts_ref[g]], sbuf.at[r], sem.at[0]).start()
        pltpu.make_async_copy(hid_ref.at[ends_ref[g]], ebuf.at[r], sem.at[1]).start()
        return carry

    def _drain(r, carry):
        pltpu.make_async_copy(hid_ref.at[0], sbuf.at[r], sem.at[0]).wait()
        pltpu.make_async_copy(hid_ref.at[0], ebuf.at[r], sem.at[1]).wait()
        return carry

    lax.fori_loop(0, tm, _issue, 0)
    lax.fori_loop(0, tm, _drain, 0)

    # ---- classifier MLP: Linear -> ReLU -> Linear (bf16 MXU, f32 accum) ----
    xs = sbuf[...].astype(w1s_ref.dtype)     # f32 features, bf16 cast only here
    xe = ebuf[...].astype(w1e_ref.dtype)
    xw = wemb_ref[...].astype(w1w_ref.dtype)

    h = jnp.dot(xs, w1s_ref[...], preferred_element_type=jnp.float32)
    h = h + jnp.dot(xe, w1e_ref[...], preferred_element_type=jnp.float32)
    h = h + jnp.dot(xw, w1w_ref[...], preferred_element_type=jnp.float32)
    h = jnp.maximum(h + b1_ref[...], 0.0).astype(w2_ref.dtype)   # bias + ReLU
    out = jnp.dot(h, w2_ref[...], preferred_element_type=jnp.float32)
    o_ref[...] = (out + b2_ref[...]).astype(o_ref.dtype)


# ------------------------------ forward pass ------------------------------ #

@jax.jit
def span_v2_forward(hidden_states, spans, width_embedding, w1, b1, w2, b2):
    """Matches SpanV2.forward.

    hidden_states: [B, S, H] f32, spans: [B, N, 3] int32 (start, end, width)
    w1: [2H+W, H], b1: [H], w2: [H, L], b2: [L]   (weights stored (in, out))
    returns logits [B, N, L] f32
    """
    B, S, H = hidden_states.shape
    N = spans.shape[1]
    W = width_embedding.shape[-1]
    L = w2.shape[1]
    assert w1.shape[0] == 2 * H + W

    rows = B * N
    Hp = _round_up(H, 128)                      # lane-dense intermediate h
    Lp = _round_up(max(L, 128), 128)            # lane-dense logits stores

    # ---- row-tile selection: MXU aligned, >=2 grid steps when possible -----
    tm_max = 1024
    if rows <= 256:
        tm = max(8, _round_up(rows, 8))
    else:
        tm = min(tm_max, _round_up(pl.cdiv(rows, 2), 256))

    lane = lambda n: _round_up(n, 128)
    # Pallas double-buffers inputs even when the block index is grid-invariant,
    # so the resident weights are counted twice.
    weight_vmem = 2 * (2 * H * Hp * 2 + W * Hp * 2 + Hp * 4 + Hp * Lp * 2 + Lp * 4)

    def vmem_est(t):
        return (weight_vmem
                + 2 * t * lane(W) * 4      # width-emb tile (x2 pipeline buffers)
                + 2 * t * Lp * 4           # f32 output tile (x2 pipeline buffers)
                + 2 * t * lane(H) * 4      # sbuf + ebuf gather scratch
                + 2 * t * Hp * 4)          # intermediate h + temporaries headroom

    cap = _vmem_capacity_bytes()
    budget = int(cap * 0.65)                # ~41 MiB on v7x, ~83 MiB on v5e/v6e
    while tm > 8 and vmem_est(tm) > budget:
        if tm > 256:
            tm = _round_up(tm // 2, 256)
        elif tm > 128:
            tm = 128
        else:
            tm = max(8, _round_up(tm // 2, 8))

    grid_m = pl.cdiv(rows, tm)
    rows_pad = grid_m * tm
    vmem_limit = int(min(max(vmem_est(tm) + (8 << 20), 32 << 20), cap))

    # ---- operands -----------------------------------------------------------
    hidden_flat = hidden_states.reshape(B * S, H)            # f32, stays in HBM

    batch_off = (jnp.arange(B, dtype=jnp.int32) * S)[:, None]
    starts_flat = (spans[:, :, 0].astype(jnp.int32) + batch_off).reshape(-1)
    ends_flat = (spans[:, :, 1].astype(jnp.int32) + batch_off).reshape(-1)
    wemb = jnp.take(width_embedding, spans[:, :, 2], axis=0).reshape(rows, W)
    wemb = wemb.astype(jnp.float32)
    if rows_pad != rows:
        pad = rows_pad - rows
        # pad indices with 0 so the (discarded) pad rows still gather in-bounds
        starts_flat = jnp.pad(starts_flat, (0, pad))
        ends_flat = jnp.pad(ends_flat, (0, pad))
        wemb = jnp.pad(wemb, ((0, pad), (0, 0)))

    # split W1 into start/end/width row blocks; pad its output dim (and the
    # second matmul's contraction dim / label dim) with zeros.
    cdt = jnp.bfloat16
    w1s = jnp.pad(w1[:H], ((0, 0), (0, Hp - H))).astype(cdt)
    w1e = jnp.pad(w1[H:2 * H], ((0, 0), (0, Hp - H))).astype(cdt)
    w1w = jnp.pad(w1[2 * H:2 * H + W], ((0, 0), (0, Hp - H))).astype(cdt)
    b1p = jnp.pad(b1, (0, Hp - H)).reshape(1, Hp).astype(jnp.float32)
    w2p = jnp.pad(w2, ((0, Hp - H), (0, Lp - L))).astype(cdt)
    b2p = jnp.pad(b2, (0, Lp - L)).reshape(1, Lp).astype(jnp.float32)

    grid_spec = pltpu.PrefetchScalarGridSpec(
        num_scalar_prefetch=2,
        grid=(grid_m,),
        in_specs=[
            pl.BlockSpec(memory_space=pl.ANY),                 # hidden_flat (HBM)
            pl.BlockSpec((tm, W), lambda i, *_: (i, 0)),       # width-emb tile
            pl.BlockSpec((H, Hp), lambda i, *_: (0, 0)),       # W1_start (resident)
            pl.BlockSpec((H, Hp), lambda i, *_: (0, 0)),       # W1_end   (resident)
            pl.BlockSpec((W, Hp), lambda i, *_: (0, 0)),       # W1_width (resident)
            pl.BlockSpec((1, Hp), lambda i, *_: (0, 0)),       # b1
            pl.BlockSpec((Hp, Lp), lambda i, *_: (0, 0)),      # W2 (resident)
            pl.BlockSpec((1, Lp), lambda i, *_: (0, 0)),       # b2
        ],
        out_specs=pl.BlockSpec((tm, Lp), lambda i, *_: (i, 0)),
        scratch_shapes=[
            pltpu.VMEM((tm, H), jnp.float32),                  # gathered start rows
            pltpu.VMEM((tm, H), jnp.float32),                  # gathered end rows
            pltpu.SemaphoreType.DMA((2,)),
        ],
    )

    out = pl.pallas_call(
        _span_mlp_kernel,
        out_shape=jax.ShapeDtypeStruct((rows_pad, Lp), jnp.float32),
        grid_spec=grid_spec,
        compiler_params=pltpu.CompilerParams(
            dimension_semantics=("parallel",),
            vmem_limit_bytes=vmem_limit),
    )(starts_flat, ends_flat, hidden_flat, wemb, w1s, w1e, w1w, b1p, w2p, b2p)

    # NOTE: the trailing rows_pad-rows rows and Lp-L columns are compute-only
    # padding (written with garbage / zeros); they are sliced off here and must
    # never feed a cross-row reduction inside the kernel.
    return out[:rows, :L].reshape(B, N, L)


# ------------------------------ parameters -------------------------------- #

class SpanV2Params:
    """Deterministic parameter container mirroring the PyTorch module."""

    def __init__(self, hidden_size, num_labels, max_span_length,
                 width_embedding_dim, key):
        k0, k1, k2, k3, k4 = jax.random.split(key, 5)
        in_features = hidden_size * 2 + width_embedding_dim
        # nn.Embedding(max_span_length + 1, width_embedding_dim)
        self.width_embedding = jax.random.normal(
            k0, (max_span_length + 1, width_embedding_dim), jnp.float32)
        # nn.Linear(in_features, hidden_size) stored as (in, out)
        lim1 = 1.0 / jnp.sqrt(in_features)
        self.w1 = jax.random.uniform(
            k1, (in_features, hidden_size), jnp.float32, -lim1, lim1)
        self.b1 = jax.random.uniform(
            k2, (hidden_size,), jnp.float32, -lim1, lim1)
        # nn.Linear(hidden_size, num_labels) stored as (in, out)
        lim2 = 1.0 / jnp.sqrt(hidden_size)
        self.w2 = jax.random.uniform(
            k3, (hidden_size, num_labels), jnp.float32, -lim2, lim2)
        self.b2 = jax.random.uniform(
            k4, (num_labels,), jnp.float32, -lim2, lim2)


def batched_index_select(hidden_states, indices):
    """hidden_states: [B, S, H]; indices: [B, N] -> [B, N, H]."""
    return jax.vmap(lambda h, idx: h[idx])(hidden_states, indices)


def reference_forward(hidden_states, spans, width_embedding, w1, b1, w2, b2):
    """Pure-JAX f32 reference for correctness checking."""
    start_emb = batched_index_select(hidden_states, spans[:, :, 0])
    end_emb = batched_index_select(hidden_states, spans[:, :, 1])
    width_emb = jnp.take(width_embedding, spans[:, :, 2], axis=0)
    feats = jnp.concatenate([start_emb, end_emb, width_emb], axis=-1)
    h = jnp.maximum(feats @ w1 + b1, 0.0)
    return h @ w2 + b2


# ---------------------------------- main ----------------------------------- #

if __name__ == "__main__":
    # Small, module-consistent shapes.
    batch_size = 2
    seq_len = 16
    hidden_size = 32
    num_spans = 8
    max_span_length = 8
    width_embedding_dim = 16
    num_labels = 8

    key = jax.random.PRNGKey(0)
    k_params, k_hidden, k_start, k_len = jax.random.split(key, 4)

    params = SpanV2Params(hidden_size, num_labels, max_span_length,
                          width_embedding_dim, k_params)

    hidden_states = jax.random.normal(
        k_hidden, (batch_size, seq_len, hidden_size), jnp.float32)

    # spans[b, n] = (start, end, width), end >= start, width <= max_span_length
    starts = jax.random.randint(
        k_start, (batch_size, num_spans), 0, seq_len, dtype=jnp.int32)
    lengths = jax.random.randint(
        k_len, (batch_size, num_spans), 0, max_span_length + 1, dtype=jnp.int32)
    ends = jnp.minimum(starts + lengths, seq_len - 1)
    widths = ends - starts
    spans = jnp.stack([starts, ends, widths], axis=-1).astype(jnp.int32)

    logits = span_v2_forward(hidden_states, spans, params.width_embedding,
                             params.w1, params.b1, params.w2, params.b2)
    logits = jax.block_until_ready(logits)

    ref = reference_forward(hidden_states, spans, params.width_embedding,
                            params.w1, params.b1, params.w2, params.b2)
    assert logits.shape == (batch_size, num_spans, num_labels)
    # Kernel runs bf16 matmuls with f32 accumulation on f32-gathered features;
    # compare against the f32 reference with a bf16-appropriate tolerance.
    assert jnp.allclose(logits, ref, atol=5e-2, rtol=5e-2), "mismatch vs reference"

    print("KERNEL_OK")
</pallas_src>

<mosaic_0001>
module attributes {stable_mosaic.version = 11 : i64} {
  func.func @_span_mlp_kernel(%arg0: i32, %arg1: memref<16xi32, #tpu.memory_space<smem>>, %arg2: memref<16xi32, #tpu.memory_space<smem>>, %arg3: memref<32x32xf32, #tpu.memory_space<any>>, %arg4: memref<16x16xf32, #tpu.memory_space<vmem>>, %arg5: memref<32x128xbf16, #tpu.memory_space<vmem>>, %arg6: memref<32x128xbf16, #tpu.memory_space<vmem>>, %arg7: memref<16x128xbf16, #tpu.memory_space<vmem>>, %arg8: memref<1x128xf32, #tpu.memory_space<vmem>>, %arg9: memref<128x128xbf16, #tpu.memory_space<vmem>>, %arg10: memref<1x128xf32, #tpu.memory_space<vmem>>, %arg11: memref<16x128xf32, #tpu.memory_space<vmem>>, %arg12: memref<16x32xf32, #tpu.memory_space<vmem>>, %arg13: memref<16x32xf32, #tpu.memory_space<vmem>>, %arg14: memref<2x!tpu.dma_semaphore, #tpu.memory_space<semaphore_mem>>) attributes {dimension_semantics = [#tpu.dimension_semantics<parallel>], iteration_bounds = array<i64: 1>, scalar_prefetch = 2 : i64, scratch_operands = 3 : i64, tpu.core_type = #tpu.core_type<tc>, window_params = [{}, {transform_indices = @transform_1, window_bounds = array<i64: 16, 16>}, {pipeline_mode = #tpu.pipeline_mode<synchronous>, transform_indices = @transform_2, window_bounds = array<i64: 32, 128>}, {pipeline_mode = #tpu.pipeline_mode<synchronous>, transform_indices = @transform_3, window_bounds = array<i64: 32, 128>}, {pipeline_mode = #tpu.pipeline_mode<synchronous>, transform_indices = @transform_4, window_bounds = array<i64: 16, 128>}, {pipeline_mode = #tpu.pipeline_mode<synchronous>, transform_indices = @transform_5, window_bounds = array<i64: 1, 128>}, {pipeline_mode = #tpu.pipeline_mode<synchronous>, transform_indices = @transform_6, window_bounds = array<i64: 128, 128>}, {pipeline_mode = #tpu.pipeline_mode<synchronous>, transform_indices = @transform_7, window_bounds = array<i64: 1, 128>}, {transform_indices = @transform_8, window_bounds = array<i64: 16, 128>}]} {
    %c16_i32 = arith.constant 16 : i32
    %0 = arith.muli %arg0, %c16_i32 : i32
    %c0_i32 = arith.constant 0 : i32
    %c16_i32_0 = arith.constant 16 : i32
    %1 = arith.addi %c0_i32, %c16_i32_0 : i32
    %c1_i32 = arith.constant 1 : i32
    scf.for %arg15 = %c0_i32 to %1 step %c1_i32  : i32 {
      %29 = arith.addi %0, %arg15 : i32
      %30 = arith.index_cast %29 : i32 to index
      %31 = memref.load %arg1[%30] : memref<16xi32, #tpu.memory_space<smem>>
      %c0_i32_29 = arith.constant 0 : i32
      %c0_i32_30 = arith.constant 0 : i32
      %32 = tpu.memref_slice %arg3[%31, %c0_i32_30] : memref<32x32xf32, #tpu.memory_space<any>> -> memref<1x32xf32, #tpu.memory_space<any>>
      %33 = tpu.memref_squeeze %32 : memref<1x32xf32, #tpu.memory_space<any>> -> memref<32xf32, #tpu.memory_space<any>>
      %c0_i32_31 = arith.constant 0 : i32
      %34 = tpu.memref_slice %arg12[%arg15, %c0_i32_31] : memref<16x32xf32, #tpu.memory_space<vmem>> -> memref<1x32xf32, #tpu.memory_space<vmem>>
      %35 = tpu.memref_squeeze %34 : memref<1x32xf32, #tpu.memory_space<vmem>> -> memref<32xf32, #tpu.memory_space<vmem>>
      %36 = tpu.memref_slice %arg14[%c0_i32_29] : memref<2x!tpu.dma_semaphore, #tpu.memory_space<semaphore_mem>> -> memref<1x!tpu.dma_semaphore, #tpu.memory_space<semaphore_mem>>
      %37 = tpu.memref_squeeze %36 : memref<1x!tpu.dma_semaphore, #tpu.memory_space<semaphore_mem>> -> memref<!tpu.dma_semaphore, #tpu.memory_space<semaphore_mem>>
      tpu.enqueue_dma source(%33 : memref<32xf32, #tpu.memory_space<any>>) target(%35 : memref<32xf32, #tpu.memory_space<vmem>>) target_semaphore(%37 : memref<!tpu.dma_semaphore, #tpu.memory_space<semaphore_mem>>)
      %38 = arith.index_cast %29 : i32 to index
      %39 = memref.load %arg2[%38] : memref<16xi32, #tpu.memory_space<smem>>
      %c1_i32_32 = arith.constant 1 : i32
      %c0_i32_33 = arith.constant 0 : i32
      %40 = tpu.memref_slice %arg3[%39, %c0_i32_33] : memref<32x32xf32, #tpu.memory_space<any>> -> memref<1x32xf32, #tpu.memory_space<any>>
      %41 = tpu.memref_squeeze %40 : memref<1x32xf32, #tpu.memory_space<any>> -> memref<32xf32, #tpu.memory_space<any>>
      %c0_i32_34 = arith.constant 0 : i32
      %42 = tpu.memref_slice %arg13[%arg15, %c0_i32_34] : memref<16x32xf32, #tpu.memory_space<vmem>> -> memref<1x32xf32, #tpu.memory_space<vmem>>
      %43 = tpu.memref_squeeze %42 : memref<1x32xf32, #tpu.memory_space<vmem>> -> memref<32xf32, #tpu.memory_space<vmem>>
      %44 = tpu.memref_slice %arg14[%c1_i32_32] : memref<2x!tpu.dma_semaphore, #tpu.memory_space<semaphore_mem>> -> memref<1x!tpu.dma_semaphore, #tpu.memory_space<semaphore_mem>>
      %45 = tpu.memref_squeeze %44 : memref<1x!tpu.dma_semaphore, #tpu.memory_space<semaphore_mem>> -> memref<!tpu.dma_semaphore, #tpu.memory_space<semaphore_mem>>
      tpu.enqueue_dma source(%41 : memref<32xf32, #tpu.memory_space<any>>) target(%43 : memref<32xf32, #tpu.memory_space<vmem>>) target_semaphore(%45 : memref<!tpu.dma_semaphore, #tpu.memory_space<semaphore_mem>>)
    }
    %c16_i32_1 = arith.constant 16 : i32
    %c0_i32_2 = arith.constant 0 : i32
    %c16_i32_3 = arith.constant 16 : i32
    %2 = arith.addi %c0_i32_2, %c16_i32_3 : i32
    %c1_i32_4 = arith.constant 1 : i32
    scf.for %arg15 = %c0_i32_2 to %2 step %c1_i32_4  : i32 {
      %c0_i32_29 = arith.constant 0 : i32
      %c0_i32_30 = arith.constant 0 : i32
      %c0_i32_31 = arith.constant 0 : i32
      %29 = tpu.memref_slice %arg3[%c0_i32_29, %c0_i32_31] : memref<32x32xf32, #tpu.memory_space<any>> -> memref<1x32xf32, #tpu.memory_space<any>>
      %30 = tpu.memref_squeeze %29 : memref<1x32xf32, #tpu.memory_space<any>> -> memref<32xf32, #tpu.memory_space<any>>
      %c0_i32_32 = arith.constant 0 : i32
      %31 = tpu.memref_slice %arg12[%arg15, %c0_i32_32] : memref<16x32xf32, #tpu.memory_space<vmem>> -> memref<1x32xf32, #tpu.memory_space<vmem>>
      %32 = tpu.memref_squeeze %31 : memref<1x32xf32, #tpu.memory_space<vmem>> -> memref<32xf32, #tpu.memory_space<vmem>>
      %33 = tpu.memref_slice %arg14[%c0_i32_30] : memref<2x!tpu.dma_semaphore, #tpu.memory_space<semaphore_mem>> -> memref<1x!tpu.dma_semaphore, #tpu.memory_space<semaphore_mem>>
      %34 = tpu.memref_squeeze %33 : memref<1x!tpu.dma_semaphore, #tpu.memory_space<semaphore_mem>> -> memref<!tpu.dma_semaphore, #tpu.memory_space<semaphore_mem>>
      tpu.wait_dma2 semaphore(%34 : memref<!tpu.dma_semaphore, #tpu.memory_space<semaphore_mem>>) src(%30 : memref<32xf32, #tpu.memory_space<any>>) dst(%32 : memref<32xf32, #tpu.memory_space<vmem>>)
      %c0_i32_33 = arith.constant 0 : i32
      %c1_i32_34 = arith.constant 1 : i32
      %c0_i32_35 = arith.constant 0 : i32
      %35 = tpu.memref_slice %arg3[%c0_i32_33, %c0_i32_35] : memref<32x32xf32, #tpu.memory_space<any>> -> memref<1x32xf32, #tpu.memory_space<any>>
      %36 = tpu.memref_squeeze %35 : memref<1x32xf32, #tpu.memory_space<any>> -> memref<32xf32, #tpu.memory_space<any>>
      %c0_i32_36 = arith.constant 0 : i32
      %37 = tpu.memref_slice %arg13[%arg15, %c0_i32_36] : memref<16x32xf32, #tpu.memory_space<vmem>> -> memref<1x32xf32, #tpu.memory_space<vmem>>
      %38 = tpu.memref_squeeze %37 : memref<1x32xf32, #tpu.memory_space<vmem>> -> memref<32xf32, #tpu.memory_space<vmem>>
      %39 = tpu.memref_slice %arg14[%c1_i32_34] : memref<2x!tpu.dma_semaphore, #tpu.memory_space<semaphore_mem>> -> memref<1x!tpu.dma_semaphore, #tpu.memory_space<semaphore_mem>>
      %40 = tpu.memref_squeeze %39 : memref<1x!tpu.dma_semaphore, #tpu.memory_space<semaphore_mem>> -> memref<!tpu.dma_semaphore, #tpu.memory_space<semaphore_mem>>
      tpu.wait_dma2 semaphore(%40 : memref<!tpu.dma_semaphore, #tpu.memory_space<semaphore_mem>>) src(%36 : memref<32xf32, #tpu.memory_space<any>>) dst(%38 : memref<32xf32, #tpu.memory_space<vmem>>)
    }
    %c16_i32_5 = arith.constant 16 : i32
    %c0 = arith.constant 0 : index
    %c0_6 = arith.constant 0 : index
    %3 = vector.load %arg12[%c0, %c0_6] : memref<16x32xf32, #tpu.memory_space<vmem>>, vector<16x32xf32>
    %4 = arith.truncf %3 : vector<16x32xf32> to vector<16x32xbf16>
    %c0_7 = arith.constant 0 : index
    %c0_8 = arith.constant 0 : index
    %5 = vector.load %arg13[%c0_7, %c0_8] : memref<16x32xf32, #tpu.memory_space<vmem>>, vector<16x32xf32>
    %6 = arith.truncf %5 : vector<16x32xf32> to vector<16x32xbf16>
    %c0_9 = arith.constant 0 : index
    %c0_10 = arith.constant 0 : index
    %7 = vector.load %arg4[%c0_9, %c0_10] : memref<16x16xf32, #tpu.memory_space<vmem>>, vector<16x16xf32>
    %8 = arith.truncf %7 : vector<16x16xf32> to vector<16x16xbf16>
    %c0_11 = arith.constant 0 : index
    %c0_12 = arith.constant 0 : index
    %9 = vector.load %arg5[%c0_11, %c0_12] : memref<32x128xbf16, #tpu.memory_space<vmem>>, vector<32x128xbf16>
    %cst = arith.constant dense<0.000000e+00> : vector<16x128xf32>
    %10 = tpu.matmul %4, %9, %cst {dimension_numbers = #tpu.dot_dimension_numbers<[1], [0], [0], [1], [0, 0, 1, 1], [], []>} : vector<16x32xbf16>, vector<32x128xbf16>, vector<16x128xf32> -> vector<16x128xf32>
    %c0_13 = arith.constant 0 : index
    %c0_14 = arith.constant 0 : index
    %11 = vector.load %arg6[%c0_13, %c0_14] : memref<32x128xbf16, #tpu.memory_space<vmem>>, vector<32x128xbf16>
    %cst_15 = arith.constant dense<0.000000e+00> : vector<16x128xf32>
    %12 = tpu.matmul %6, %11, %cst_15 {dimension_numbers = #tpu.dot_dimension_numbers<[1], [0], [0], [1], [0, 0, 1, 1], [], []>} : vector<16x32xbf16>, vector<32x128xbf16>, vector<16x128xf32> -> vector<16x128xf32>
    %13 = arith.addf %10, %12 : vector<16x128xf32>
    %c0_16 = arith.constant 0 : index
    %c0_17 = arith.constant 0 : index
    %14 = vector.load %arg7[%c0_16, %c0_17] : memref<16x128xbf16, #tpu.memory_space<vmem>>, vector<16x128xbf16>
    %cst_18 = arith.constant dense<0.000000e+00> : vector<16x128xf32>
    %15 = tpu.matmul %8, %14, %cst_18 {dimension_numbers = #tpu.dot_dimension_numbers<[1], [0], [0], [1], [0, 0, 1, 1], [], []>} : vector<16x16xbf16>, vector<16x128xbf16>, vector<16x128xf32> -> vector<16x128xf32>
    %16 = arith.addf %13, %15 : vector<16x128xf32>
    %c0_19 = arith.constant 0 : index
    %c0_20 = arith.constant 0 : index
    %17 = vector.load %arg8[%c0_19, %c0_20] : memref<1x128xf32, #tpu.memory_space<vmem>>, vector<1x128xf32>
    %18 = vector.broadcast %17 : vector<1x128xf32> to vector<16x128xf32>
    %19 = arith.addf %16, %18 : vector<16x128xf32>
    %cst_21 = arith.constant 0.000000e+00 : f32
    %20 = vector.broadcast %cst_21 : f32 to vector<16x128xf32>
    %21 = arith.maximumf %19, %20 : vector<16x128xf32>
    %22 = arith.truncf %21 : vector<16x128xf32> to vector<16x128xbf16>
    %c0_22 = arith.constant 0 : index
    %c0_23 = arith.constant 0 : index
    %23 = vector.load %arg9[%c0_22, %c0_23] : memref<128x128xbf16, #tpu.memory_space<vmem>>, vector<128x128xbf16>
    %cst_24 = arith.constant dense<0.000000e+00> : vector<16x128xf32>
    %24 = tpu.matmul %22, %23, %cst_24 {dimension_numbers = #tpu.dot_dimension_numbers<[1], [0], [0], [1], [0, 0, 1, 1], [], []>} : vector<16x128xbf16>, vector<128x128xbf16>, vector<16x128xf32> -> vector<16x128xf32>
    %c0_25 = arith.constant 0 : index
    %c0_26 = arith.constant 0 : index
    %25 = vector.load %arg10[%c0_25, %c0_26] : memref<1x128xf32, #tpu.memory_space<vmem>>, vector<1x128xf32>
    %26 = vector.broadcast %25 : vector<1x128xf32> to vector<16x128xf32>
    %27 = arith.addf %24, %26 : vector<16x128xf32>
    %c0_27 = arith.constant 0 : index
    %c0_28 = arith.constant 0 : index
    %28 = vector.load %arg11[%c0_27, %c0_28] : memref<16x128xf32, #tpu.memory_space<vmem>>, vector<16x128xf32>
    tpu.vector_store %arg11[%c0_27, %c0_28], %27 {strides = array<i32>} : memref<16x128xf32, #tpu.memory_space<vmem>>, vector<16x128xf32>,
    return
  }
  func.func @transform_1(%arg0: i32, %arg1: memref<16xi32, #tpu.memory_space<smem>>, %arg2: memref<16xi32, #tpu.memory_space<smem>>) -> (i32, i32) {
    %c0_i32 = arith.constant 0 : i32
    %c0_i32_0 = arith.constant 0 : i32
    return %arg0, %c0_i32 : i32, i32
  }
  func.func @transform_2(%arg0: i32, %arg1: memref<16xi32, #tpu.memory_space<smem>>, %arg2: memref<16xi32, #tpu.memory_space<smem>>) -> (i32, i32) {
    %c0_i32 = arith.constant 0 : i32
    %c0_i32_0 = arith.constant 0 : i32
    %c0_i32_1 = arith.constant 0 : i32
    return %c0_i32, %c0_i32_0 : i32, i32
  }
  func.func @transform_3(%arg0: i32, %arg1: memref<16xi32, #tpu.memory_space<smem>>, %arg2: memref<16xi32, #tpu.memory_space<smem>>) -> (i32, i32) {
    %c0_i32 = arith.constant 0 : i32
    %c0_i32_0 = arith.constant 0 : i32
    %c0_i32_1 = arith.constant 0 : i32
    return %c0_i32, %c0_i32_0 : i32, i32
  }
  func.func @transform_4(%arg0: i32, %arg1: memref<16xi32, #tpu.memory_space<smem>>, %arg2: memref<16xi32, #tpu.memory_space<smem>>) -> (i32, i32) {
    %c0_i32 = arith.constant 0 : i32
    %c0_i32_0 = arith.constant 0 : i32
    %c0_i32_1 = arith.constant 0 : i32
    return %c0_i32, %c0_i32_0 : i32, i32
  }
  func.func @transform_5(%arg0: i32, %arg1: memref<16xi32, #tpu.memory_space<smem>>, %arg2: memref<16xi32, #tpu.memory_space<smem>>) -> (i32, i32) {
    %c0_i32 = arith.constant 0 : i32
    %c0_i32_0 = arith.constant 0 : i32
    %c0_i32_1 = arith.constant 0 : i32
    return %c0_i32, %c0_i32_0 : i32, i32
  }
  func.func @transform_6(%arg0: i32, %arg1: memref<16xi32, #tpu.memory_space<smem>>, %arg2: memref<16xi32, #tpu.memory_space<smem>>) -> (i32, i32) {
    %c0_i32 = arith.constant 0 : i32
    %c0_i32_0 = arith.constant 0 : i32
    %c0_i32_1 = arith.constant 0 : i32
    return %c0_i32, %c0_i32_0 : i32, i32
  }
  func.func @transform_7(%arg0: i32, %arg1: memref<16xi32, #tpu.memory_space<smem>>, %arg2: memref<16xi32, #tpu.memory_space<smem>>) -> (i32, i32) {
    %c0_i32 = arith.constant 0 : i32
    %c0_i32_0 = arith.constant 0 : i32
    %c0_i32_1 = arith.constant 0 : i32
    return %c0_i32, %c0_i32_0 : i32, i32
  }
  func.func @transform_8(%arg0: i32, %arg1: memref<16xi32, #tpu.memory_space<smem>>, %arg2: memref<16xi32, #tpu.memory_space<smem>>) -> (i32, i32) {
    %c0_i32 = arith.constant 0 : i32
    %c0_i32_0 = arith.constant 0 : i32
    return %arg0, %c0_i32 : i32, i32
  }
}

</mosaic_0001>

<bundles_post_ra>
// kernel: span_v2_forward.1
= control target key start
LH: loop header
LB: loop body
LE: loop exit
PB: predicated region body
PF: predicated region fallthrough
CT: control target
= control target key end

     0   :  { %s808_s0 = inlined_call_operand.vmem [shape: s32[16], index: 0, kind: input, shape index: {}]   ;;  %s809_s2 = inlined_call_operand.vmem [shape: f32[32,32], index: 2, kind: input, shape index: {}]   ;;  %s810_s3 = inlined_call_operand.vmem [shape: f32[16,16], index: 3, kind: input, shape index: {}]   ;;  %s811_s4 = inlined_call_operand.vmem [shape: bf16[32,128], index: 4, kind: input, shape index: {}]   ;;  %s812_s5 = inlined_call_operand.vmem [shape: bf16[32,128], index: 5, kind: input, shape index: {}]   ;;  %s813_s6 = inlined_call_operand.vmem [shape: bf16[16,128], index: 6, kind: input, shape index: {}]   ;;  %s814_s7 = inlined_call_operand.vmem [shape: f32[1,128], index: 7, kind: input, shape index: {}]   ;;  %s815_s8 = inlined_call_operand.vmem [shape: bf16[128,128], index: 8, kind: input, shape index: {}]   ;;  %s816_s9 = inlined_call_operand.vmem [shape: f32[1,128], index: 9, kind: input, shape index: {}]   ;;  %s817_s10 = inlined_call_operand.vmem [shape: f32[16,128], index: 10, kind: output, shape index: {}]   ;;  %s818_s1 = inlined_call_operand.vmem [shape: s32[16], index: 1, kind: input, shape index: {}]  }
   0x1   :  { %s15_s15 = sshll.u32 %s808_s0, 4  ;;  %s19_s18 = sshll.u32 %s818_s1, 4  ;;  %s16_s15 = int_to_ptr.vmem [resolvable:$true] %s15_s15  ;;  %s20_s18 = int_to_ptr.vmem [resolvable:$true] %s19_s18 }
   0x2   :  { %s628_s19 = scalar_lea.vmem %s16_s15, 16  ;;  %p633_p1 = scmp.lt.s32.totalorder %s16_s15, %s16_s15 }
   0x3   :  { %p629_p0 = scmp.ne.s32.totalorder %s16_s15, %s628_s19  ;;  %p634_p2 = scmp.lt.s32.totalorder %s628_s19, %s628_s19 }
   0x5   :  { %p635_p3 = por %p634_p2, %p633_p1 }
   0x7   :  { %p636_p4 = pnand %p635_p3, %p629_p0 }
   0x9   :  { %639 = shalt.err (!%p636_p4)  }
   0xa   :  { %s674_s20 = smov [#allocation6]   ;;  %s640_s21 = scalar_lea.vmem %s20_s18, 16 }
   0xb   :  { %18 = dma.vmem_to_smem %s16_s15, 16, %s674_s20, [#allocation5] }
   0xc   :  { %p641_p5 = scmp.ne.s32.totalorder %s20_s18, %s640_s21  ;;  %p645_p6 = scmp.lt.s32.totalorder %s20_s18, %s20_s18 }
   0xd   :  { %p646_p7 = scmp.lt.s32.totalorder %s640_s21, %s640_s21 }
   0xf   :  { %p647_p8 = por %p646_p7, %p645_p6 }
  0x11   :  { %p648_p9 = pnand %p647_p8, %p641_p5 }
  0x13   :  { %651 = shalt.err (!%p648_p9)  }
  0x14   :  { %s675_s0 = smov [#allocation7]  }
  0x15   :  { %22 = dma.vmem_to_smem %s20_s18, 16, %s675_s0, [#allocation5] }
  0x16   :  { %660 = dma.done.wait [#allocation5], 32 }
  0x17   :  { %661 = vsyncadd [#allocation5], 4294967264 }
  0x18   :  { %24 = sfence }
  0x19   :  { %s666_s1 = smov 0  }
  0x1a LB: > { %s48_s22 = sld [smem:[#allocation6 + %s668_s1]]  ;;  %s50_s26 = scalar_lea.vmem [#allocation2], %s668_s1  ;;  %s668_s1 = sphi %s666_s1, %s46_s1  }
  0x20   : > { %s49_s25 = scalar_lea.vmem %s809_s2, %s48_s22 }
  0x21   : > { %v68_v0 = vld [vmem:[%s49_s25] sm:$0x1] }
  0x22   : > { %69 = vst [vmem:[%s50_s26] sm:$0x1] %v68_v0 }
  0x23   : > { %94 = vsyncadd [#allocation4], 16  ;;  %s95_s27 = sld [smem:[#allocation7 + %s668_s1]]  ;;  %s97_s11 = scalar_lea.vmem [#allocation3], %s668_s1 }
  0x29   : > { %s96_s30 = scalar_lea.vmem %s809_s2, %s95_s27 }
  0x2a   : > { %v116_v1 = vld [vmem:[%s96_s30] sm:$0x1] }
  0x2b   : > { %117 = vst [vmem:[%s97_s11] sm:$0x1] %v116_v1 }
  0x2c   : > { %142 = vsyncadd [#allocation4 + $0x1], 16  ;;  %s46_s1 = sadd.s32 1, %s668_s1  }
  0x2d   : > { %p43_p10 = scmp.ge.s32.totalorder %s46_s1, 16  }
  0x2e   :  { %s670_s12 = smov (%p43_p10), 0  }
  0x2f   :  { %45 = sbr.rel (!%p43_p10) target bundleno = 26 (0x1a), region = 149 }
  0x36 LB: > { %662 = dma.done.wait [#allocation4], 16  ;;  %s672_s12 = sphi %s670_s12, %s148_s12  }
  0x37   : > { %663 = vsyncadd [#allocation4], 4294967280 }
  0x38   : > { %664 = dma.done.wait [#allocation4 + $0x1], 16 }
  0x39   : > { %665 = vsyncadd [#allocation4 + $0x1], 4294967280  ;;  %s148_s12 = sadd.s32 1, %s672_s12  }
  0x3a   : > { %p145_p11 = scmp.ge.s32.totalorder %s148_s12, 16  }
  0x3b   :  { %v615_v2 = vld [vmem:[%s812_s5] sm:$0xff] (%p145_p11)   ;;  %v676_v3 = vmov (%p145_p11), 0.0   ;;  %v616_v4 = vld [vmem:[%s812_s5 + $0x8] sm:$0xff] (%p145_p11)   ;;  %vm677_vm0 = vmmov (%p145_p11), 0   ;;  %v157_v5 = vld [vmem:[#allocation3] sm:$0xff] (%p145_p11)  ;;  %vm183_vm1 = vcmask (%p145_p11), 261120  }
  0x3c   :  { %147 = sbr.rel (!%p145_p11) target bundleno = 54 (0x36), region = 160  ;;  %553 = vmatprep.subr.bf16.mxu0 (%p145_p11), %v676_v3  ;;  %575 = vmatprep.subr.bf16.mxu1 (%p145_p11), %v676_v3  ;;  %v158_v6 = vld [vmem:[#allocation3 + $0x8] sm:$0xff] (%p145_p11)  ;;  %v617_v8 = vld [vmem:[%s811_s4] sm:$0xff] (%p145_p11)   ;;  %v618_v10 = vld [vmem:[%s811_s4 + $0x8] sm:$0xff] (%p145_p11)   ;;  %vm292_vm2 = vcmask (%p145_p11), 130048  }
  0x3d   :  { %554 = vmatpush3.bf16.msra.mxu0 (%p145_p11), %v615_v2  ;;  %557 = vmatprep.mubr.msk.bf16.mxu0 (%p145_p11), %vm677_vm0, %v676_v3  ;;  %v159_v7 = vpack.c.bf16 (%p145_p11), %v158_v6, %v157_v5  ;;  %v620_v9 = vld [vmem:[%s815_s8] sm:$0xff] (%p145_p11)   ;;  %v155_v12 = vld [vmem:[#allocation2 + $0x8] sm:$0xff] (%p145_p11)  ;;  %v622_v19 = vld [vmem:[%s815_s8 + $0x10] sm:$0xff] (%p145_p11)  }
  0x3e   :  { %555 = vmatprep.subr.bf16.mxu0 (%p145_p11), %v676_v3  ;;  %591 = vmatprep.mubr.msk.bf16.mxu1 (%p145_p11), %vm677_vm0, %v676_v3  ;;  %v154_v11 = vld [vmem:[#allocation2] sm:$0xff] (%p145_p11)  ;;  %v161_v16 = vld [vmem:[%s810_s3 + $0x8] sm:$0xff] (%p145_p11)  ;;  %v623_v20 = vld [vmem:[%s815_s8 + $0x18] sm:$0xff] (%p145_p11)  }
  0x3f   :  { %576 = vmatpush3.bf16.msra.mxu1 (%p145_p11), %v620_v9  ;;  %v156_v13 = vpack.c.bf16 (%p145_p11), %v155_v12, %v154_v11  ;;  %v619_v14 = vld [vmem:[%s813_s6] sm:$0xff] (%p145_p11)   ;;  %v621_v18 = vld [vmem:[%s815_s8 + $0x8] sm:$0xff] (%p145_p11)   ;;  %v626_v23 = vld [vmem:[%s815_s8 + $0x30] sm:$0xff] (%p145_p11)  }
  0x40   :  { %577 = vmatprep.subr.bf16.mxu1 (%p145_p11), %v676_v3  ;;  %v160_v15 = vld [vmem:[%s810_s3] sm:$0xff] (%p145_p11)  ;;  %v625_v22 = vld [vmem:[%s815_s8 + $0x28] sm:$0xff] (%p145_p11)   ;;  %v627_v24 = vld [vmem:[%s815_s8 + $0x38] sm:$0xff] (%p145_p11)  }
  0x41   :  { %556 = vmatpush3.bf16.msra.mxu0 (%p145_p11), %v616_v4  ;;  %v162_v17 = vpack.c.bf16 (%p145_p11), %v161_v16, %v160_v15  ;;  %v624_v21 = vld [vmem:[%s815_s8 + $0x20] sm:$0xff] (%p145_p11)  }
  0x42   :  { %561 = vmatprep.subr.bf16.mxu0 (%p145_p11), %v676_v3  ;;  %v524_v36 = vld [vmem:[%s814_s7] ss:$0 sm:$0xff] (%p145_p11) }
  0x43   :  { %578 = vmatpush3.bf16.msra.mxu1 %v621_v18  ;;  %v525_v47 = vld [vmem:[%s816_s9] ss:$0 sm:$0xff] }
  0x44   :  { %558 = vmatmul.mubr.msk.bf16.vlgmr.msra.gmra.mrb[0].mxu0 %vm183_vm1, %v159_v7  ;;  %579 = vmatprep.subr.bf16.mxu1 %v676_v3 }
  0x45   :  { %562 = vmatpush3.bf16.msra.mxu0 %v617_v8  ;;  %565 = vmatprep.mubr.msk.bf16.mxu0 %vm677_vm0, %v676_v3 }
  0x46   :  { %563 = vmatprep.subr.bf16.mxu0 %v676_v3 }
  0x47   :  { %580 = vmatpush3.bf16.msra.mxu1 %v622_v19 }
  0x48   :  { %581 = vmatprep.subr.bf16.mxu1 %v676_v3 }
  0x49   :  { %564 = vmatpush3.bf16.msra.mxu0 %v618_v10 }
  0x4a   :  { %569 = vmatprep.subr.bf16.mxu0 %v676_v3 }
  0x4b   :  { %582 = vmatpush3.bf16.msra.mxu1 %v623_v20 }
  0x4c   :  { %566 = vmatmul.mubr.msk.bf16.vlgmr.msra.gmra.mrb[4].mxu0 %vm183_vm1, %v156_v13  ;;  %583 = vmatprep.subr.bf16.mxu1 %v676_v3 }
  0x4d   :  { %570 = vmatpush3.bf16.msra.mxu0 %v619_v14  ;;  %571 = vmatprep.mubr.msk.bf16.mxu0 %vm677_vm0, %v676_v3 }
  0x4f   :  { %584 = vmatpush3.bf16.msra.mxu1 %v624_v21 }
  0x50   :  { %585 = vmatprep.subr.bf16.mxu1 %v676_v3 }
  0x53   :  { %586 = vmatpush3.bf16.msra.mxu1 %v625_v22 }
  0x54   :  { %572 = vmatmul.mubr.msk.bf16.vlgmr.msra.gmra.mrb[8].mxu0 %vm292_vm2, %v162_v17  ;;  %587 = vmatprep.subr.bf16.mxu1 %v676_v3 }
  0x57   :  { %588 = vmatpush3.bf16.msra.mxu1 %v626_v23 }
  0x58   :  { %589 = vmatprep.subr.bf16.mxu1 %v676_v3 }
  0x5b   :  { %590 = vmatpush3.bf16.msra.mxu1 %v627_v24 }
 0x117   :  { %v221_v25 = vpop.f32.mrb[0].mxu0 }
 0x118   :  { %v559_v26 = vpop.f32.mrb[1].mxu0 }
 0x119   :  { %v224_v27 = vpop.f32.mrb[2].mxu0 }
 0x11a   :  { %v560_v28 = vpop.f32.mrb[3].mxu0 }
 0x11f   :  { %v277_v29 = vpop.f32.mrb[4].mxu0 }
 0x120   :  { %v278_v30 = vadd.f32 %v277_v29, %v221_v25  ;;  %v567_v31 = vpop.f32.mrb[5].mxu0 }
 0x121   :  { %v280_v32 = vpop.f32.mrb[6].mxu0 }
 0x122   :  { %v281_v33 = vadd.f32 %v280_v32, %v224_v27  ;;  %v568_v34 = vpop.f32.mrb[7].mxu0 }
 0x127   :  { %v330_v35 = vpop.f32.mrb[8].mxu0 }
 0x128   :  { %v337_v37 = vadd.f32 %v330_v35, %v278_v30  ;;  %v573_v38 = vpop.f32.mrb[9].mxu0 }
 0x129   :  { %v333_v39 = vpop.f32.mrb[10].mxu0 }
 0x12a   :  { %v346_v40 = vadd.f32 %v524_v36, %v337_v37  ;;  %v338_v41 = vadd.f32 %v333_v39, %v281_v33  ;;  %v574_v42 = vpop.f32.mrb[11].mxu0 }
 0x12c   :  { %v347_v43 = vadd.f32 %v524_v36, %v338_v41  ;;  %v348_v44 = vmax.f32 %v346_v40, 0.0 }
 0x12e   :  { %v349_v45 = vmax.f32 %v347_v43, 0.0 }
 0x130   :  { %v350_v46 = vpack.c.bf16 %v349_v45, %v348_v44 }
 0x132   :  { %592 = vmatmul.mubr.bf16.vlgmr.msra.gmra.mrb[0].mxu1 %v350_v46 }
 0x205   :  { %v456_v48 = vpop.f32.mrb[0].mxu1 }
 0x206   :  { %v457_v49 = vadd.f32 %v525_v47, %v456_v48  ;;  %v593_v50 = vpop.f32.mrb[1].mxu1 }
 0x207   :  { %v459_v51 = vpop.f32.mrb[2].mxu1 }
 0x208   :  { %463 = vst [vmem:[%s817_s10] sm:$0xff] %v457_v49  ;;  %v460_v52 = vadd.f32 %v525_v47, %v459_v51  ;;  %v594_v53 = vpop.f32.mrb[3].mxu1 }
 0x20a   :  { %464 = vst [vmem:[%s817_s10 + $0x8] sm:$0xff] %v460_v52 }
 0x20b   :  { %469 = vsyncmov [#allocation4] }
 0x20e   :  { %s470_s20 = vpop.sfrf %469 }
 0x20f   :  { %p534_p12 = scmp.ne.s32.totalorder %s470_s20, 0 }
 0x211   :  { %474 = shalt.err (%p534_p12)  }
 0x212   :  { %476 = vsyncmov [#allocation4 + $0x1] }
 0x215   :  { %s477_s9 = vpop.sfrf %476 }
 0x216   :  { %p535_p13 = scmp.ne.s32.totalorder %s477_s9, 0 }
 0x218   :  { %481 = shalt.err (%p535_p13)  }

</bundles_post_ra>
